<compile_context>
chip_gen: v6e
topology: v6e:2x2x1
jax: 0.10.0
libtpu: 0.0.40
codegen_flags: <defaults>
</compile_context>

<pallas_src>
import math
from functools import partial

import jax
import jax.numpy as jnp
from jax import lax
from jax.experimental import pallas as pl
from jax.experimental.pallas import tpu as pltpu


# ----------------------------------------------------------------------------
# helpers
# ----------------------------------------------------------------------------
def _pick_tile(dim, candidates):
    """Largest candidate that evenly divides `dim`; otherwise the full dim
    (a full-extent block is always a legal BlockSpec).  Hot-path callers pad
    their dims to multiples of 128 first so the fallback only fires on small
    weight dims where it is VMEM-safe."""
    for c in candidates:
        if dim >= c and dim % c == 0:
            return c
    return dim


def _vmem_limit_bytes():
    """Per-generation scoped-VMEM limit: ~48 MiB on v7x (64 MiB physical),
    ~64 MiB on v5e/v6e (128 MiB physical); conservative 32 MiB fallback."""
    try:
        cap = getattr(pltpu.get_tpu_info(), "vmem_capacity_bytes", None)
        if cap is None:
            return 32 * 1024 * 1024
        if cap <= 64 * 1024 * 1024:
            return 48 * 1024 * 1024
        return 64 * 1024 * 1024
    except Exception:
        return 32 * 1024 * 1024


# ----------------------------------------------------------------------------
# Tiled matmul: y = x @ w   (w already in (in, out) layout)
# ----------------------------------------------------------------------------
def _matmul_kernel(x_ref, w_ref, o_ref, acc_ref):
    @pl.when(pl.program_id(2) == 0)
    def _():
        acc_ref[...] = jnp.zeros_like(acc_ref)

    acc_ref[...] += jnp.dot(x_ref[...], w_ref[...],
                            preferred_element_type=jnp.float32)

    @pl.when(pl.program_id(2) == pl.num_programs(2) - 1)
    def _():
        o_ref[...] = acc_ref[...].astype(o_ref.dtype)


def pallas_matmul(x, w):
    """x: (M, K), w: (K, N) -> (M, N). Tiled, pipelined, f32 accumulation."""
    M, K = x.shape
    K2, N = w.shape
    assert K == K2
    # Enlarged tiles (review): 512x512x1024 f32 is ~11 MiB double-buffered --
    # well under the 48 MiB v7x scoped limit and amortizes per-step overhead.
    tm = _pick_tile(M, (512, 256, 128, 64, 32, 16, 8))
    tn = _pick_tile(N, (512, 256, 128))
    tk = _pick_tile(K, (1024, 512, 256, 128))
    grid = (M // tm, N // tn, K // tk)
    return pl.pallas_call(
        _matmul_kernel,
        out_shape=jax.ShapeDtypeStruct((M, N), x.dtype),
        grid=grid,
        in_specs=[
            pl.BlockSpec((tm, tk), lambda i, j, k: (i, k)),
            pl.BlockSpec((tk, tn), lambda i, j, k: (k, j)),
        ],
        out_specs=pl.BlockSpec((tm, tn), lambda i, j, k: (i, j)),
        scratch_shapes=[pltpu.VMEM((tm, tn), jnp.float32)],
        compiler_params=pltpu.CompilerParams(
            dimension_semantics=("parallel", "parallel", "arbitrary"),
            vmem_limit_bytes=_vmem_limit_bytes(),
        ),
    )(x, w)


# ----------------------------------------------------------------------------
# Flash attention over the lane-dense 'b n (h d)' layout
#   - softmax scale already folded into the q weights (no in-kernel rescale)
#   - one lane-dense (tq, HD) f32 accumulator, per-head lane-slice updates
#   - optional fused out-projection (w_out_t resident in VMEM)
#   - optional key masking for the padded tail (kv_len)
# ----------------------------------------------------------------------------
def _flash_attn_kernel(*refs, n_heads, head_dim, kv_len, fuse_out_proj):
    if fuse_out_proj:
        q_ref, k_ref, v_ref, w_ref, o_ref, m_sc, l_sc, acc_sc = refs
    else:
        q_ref, k_ref, v_ref, o_ref, m_sc, l_sc, acc_sc = refs
        w_ref = None

    H, D = n_heads, head_dim
    ki = pl.program_id(2)
    tk = k_ref.shape[1]

    @pl.when(ki == 0)
    def _():
        m_sc[...] = jnp.full_like(m_sc, -jnp.inf)
        l_sc[...] = jnp.zeros_like(l_sc)
        acc_sc[...] = jnp.zeros_like(acc_sc)

    # Key-padding mask (only emitted when the sequence was padded).  Padding
    # is a suffix, so the first KV tile always has >=1 valid key -> no NaNs.
    if kv_len is not None:
        key_idx = ki * tk + lax.broadcasted_iota(jnp.int32, (1, tk), 1)
        valid = key_idx < kv_len            # (1, tk), broadcasts over (tq, tk)
    else:
        valid = None

    def _col(h):
        off = h * D
        if not isinstance(off, int):        # traced h (fori_loop path)
            off = pl.multiple_of(off, D)
        return pl.ds(off, D)

    def head_step(h):
        col = _col(h)
        qh = q_ref[0, :, col]               # (tq, D) -- scale already folded in
        kh = k_ref[0, :, col]               # (tk, D)
        vh = v_ref[0, :, col]               # (tk, D)
        # q @ k^T without materializing a transpose: contract last dims.
        s = lax.dot_general(qh, kh, (((1,), (1,)), ((), ())),
                            preferred_element_type=jnp.float32)   # (tq, tk)
        if valid is not None:
            s = jnp.where(valid, s, -jnp.inf)
        m_prev = m_sc[h]                                          # (tq, 1)
        m_new = jnp.maximum(m_prev, jnp.max(s, axis=-1, keepdims=True))
        alpha = jnp.exp(m_prev - m_new)
        p = jnp.exp(s - m_new)
        l_sc[h] = alpha * l_sc[h] + jnp.sum(p, axis=-1, keepdims=True)
        pv = lax.dot_general(p.astype(vh.dtype), vh, (((1,), (0,)), ((), ())),
                             preferred_element_type=jnp.float32)  # (tq, D)
        acc_sc[:, col] = alpha * acc_sc[:, col] + pv
        m_sc[h] = m_new

    if H <= 8:
        # small head count: static unroll
        for h in range(H):
            head_step(h)
    else:
        # large head count: fori_loop bounds vreg live ranges (sweep unroll)
        def body(h, carry):
            head_step(h)
            return carry
        lax.fori_loop(0, H, body, 0, unroll=False)

    @pl.when(ki == pl.num_programs(2) - 1)
    def _():
        def normalize(h):
            col = _col(h)
            l_h = l_sc[h]
            r = pl.reciprocal(l_h, approx=True)   # EUP slot (free here)
            r = r * (2.0 - l_h * r)               # 1 Newton step -> ~f32 exact
            acc_sc[:, col] = acc_sc[:, col] * r

        if H <= 8:
            for h in range(H):
                normalize(h)
        else:
            def nbody(h, carry):
                normalize(h)
                return carry
            lax.fori_loop(0, H, nbody, 0, unroll=False)

        o_tile = acc_sc[...]                      # (tq, HD) lane-dense f32
        if fuse_out_proj:
            # fused out-projection: one MXU matmul against the resident w_out,
            # single lane-dense store of the (tq, C) result -- no (B,N,HD)
            # HBM round trip.
            o_ref[0] = jnp.dot(o_tile, w_ref[...],
                               preferred_element_type=jnp.float32
                               ).astype(o_ref.dtype)
        else:
            o_ref[0] = o_tile.astype(o_ref.dtype)


def pallas_attention(qkv3, w_out_t, *, n_heads, head_dim, n_feats,
                     kv_len=None, fuse_out_proj=False):
    """qkv3: (B, N_pad, 3*H*D) lane-dense [q | k | v] projection output.
    Returns (B, N_pad, n_feats) if fused, else (B, N_pad, H*D)."""
    B, N_pad, threeHD = qkv3.shape
    H, D = n_heads, head_dim
    HD = H * D
    assert threeHD == 3 * HD

    # Sweep note (review): tk in {128, 256}; 512 blows the per-head S/P
    # working set past the vreg file.  Keep KV reduction axis last.
    tq = _pick_tile(N_pad, (256, 128))
    tk = _pick_tile(N_pad, (256, 128))
    grid = (B, N_pad // tq, N_pad // tk)

    if HD % 128 == 0:
        # Zero-copy q/k/v selection: column-block index 0/1/2 into the raw
        # projection output (no wrapper slice copies).
        q_in = k_in = v_in = qkv3
        q_spec = pl.BlockSpec((1, tq, HD), lambda b, qi, ki: (b, qi, 0))
        k_spec = pl.BlockSpec((1, tk, HD), lambda b, qi, ki: (b, ki, 1))
        v_spec = pl.BlockSpec((1, tk, HD), lambda b, qi, ki: (b, ki, 2))
    else:
        # HD not lane-aligned: a HD-wide column block would violate the
        # (8,128) rule, so fall back to explicit slices (one extra HBM copy).
        q_in = qkv3[:, :, :HD]
        k_in = qkv3[:, :, HD:2 * HD]
        v_in = qkv3[:, :, 2 * HD:]
        q_spec = pl.BlockSpec((1, tq, HD), lambda b, qi, ki: (b, qi, 0))
        k_spec = pl.BlockSpec((1, tk, HD), lambda b, qi, ki: (b, ki, 0))
        v_spec = pl.BlockSpec((1, tk, HD), lambda b, qi, ki: (b, ki, 0))

    # Note: if xprof shows the K/V DMA exposed, sweep pipeline_mode=
    # pl.Buffered(3) on k_spec/v_spec (VMEM headroom exists at tk<=256).

    out_dim = n_feats if fuse_out_proj else HD
    o_spec = pl.BlockSpec((1, tq, out_dim), lambda b, qi, ki: (b, qi, 0))

    in_specs = [q_spec, k_spec, v_spec]
    inputs = [q_in, k_in, v_in]
    if fuse_out_proj:
        # w_out_t constant across the grid -> fetched once, stays resident.
        in_specs.append(pl.BlockSpec((HD, n_feats), lambda b, qi, ki: (0, 0)))
        inputs.append(w_out_t)

    kernel = partial(_flash_attn_kernel, n_heads=H, head_dim=D,
                     kv_len=kv_len, fuse_out_proj=fuse_out_proj)
    return pl.pallas_call(
        kernel,
        out_shape=jax.ShapeDtypeStruct((B, N_pad, out_dim), qkv3.dtype),
        grid=grid,
        in_specs=in_specs,
        out_specs=o_spec,
        scratch_shapes=[
            pltpu.VMEM((H, tq, 1), jnp.float32),   # running max m (per head)
            pltpu.VMEM((H, tq, 1), jnp.float32),   # running sum l (per head)
            pltpu.VMEM((tq, HD), jnp.float32),     # lane-dense accumulator
        ],
        compiler_params=pltpu.CompilerParams(
            dimension_semantics=("parallel", "parallel", "arbitrary"),
            vmem_limit_bytes=_vmem_limit_bytes(),
        ),
    )(*inputs)


# ----------------------------------------------------------------------------
# One-time weight relayout (outside the hot path)
# ----------------------------------------------------------------------------
def prepare_weights(w_qkv, w_out, n_heads, head_dim):
    """
    w_qkv : (3*H*D, C)  torch Linear layout, rows ordered (h, d, qkv)
            (because the module does rearrange 'b n (h d qkv)')
    w_out : (C, H*D)    torch Linear layout
    Returns:
      w_qkv_packed : (C, 3*H*D)  columns = [q | k | v], each ordered (h, d),
                     with the softmax scale 1/sqrt(D) folded into q.
      w_out_t      : (H*D, C)
    """
    H, D = n_heads, head_dim
    C = w_qkv.shape[1]
    w = w_qkv.reshape(H, D, 3, C)
    w = jnp.transpose(w, (2, 0, 1, 3)).reshape(3, H * D, C)
    w = w.at[0].multiply(1.0 / math.sqrt(D))   # fold softmax scale into q
    w = w.reshape(3 * H * D, C)
    return w.T, w_out.T


# ----------------------------------------------------------------------------
# Attention module forward
# ----------------------------------------------------------------------------
def attention_forward(x, w_qkv_packed, w_out_t, n_heads, head_dim):
    """
    x             : (B, N, C)
    w_qkv_packed  : (C, 3*H*D)   (from prepare_weights; scale folded into q)
    w_out_t       : (H*D, C)     (from prepare_weights)
    returns (out (B, N, C), kv_to_cache (B, N, 2, H, D))
    """
    # TODO(synk): pad_mask/attn_mask, cached_kv concat, rotary embeddings,
    # learned position embeddings and dropout are not exercised by the module
    # defaults and are not implemented here.
    B, N, C = x.shape
    H, D = n_heads, head_dim
    HD = H * D

    # Pad N to a multiple of 128 so tiles never collapse to the full extent
    # (keeps KV pipelining, stays inside v7x's 64 MiB VMEM) and the padded
    # keys are masked inside the kernel.  Padding x (zeros) means padded q/k/v
    # rows are exactly zero (bias=False), so the masked softmax stays finite.
    if N % 128 == 0:
        n_pad, kv_len = N, None
    else:
        n_pad = ((N + 127) // 128) * 128
        kv_len = N
        x = jnp.pad(x, ((0, 0), (0, n_pad - N), (0, 0)))

    # qkv projection (Linear, bias=False)
    x2d = x.reshape(B * n_pad, C)
    qkv = pallas_matmul(x2d, w_qkv_packed)                  # (B*n_pad, 3*HD)
    qkv3 = qkv.reshape(B, n_pad, 3 * HD)

    # attatch_cache(cached_kv=None): stack([k, v], dim=2) == contiguous tail
    # of the projection output, just reshaped (no jnp.stack round-trip).
    kv_to_cache = qkv3[:, :N, HD:].reshape(B, N, 2, H, D)

    # Fuse the out-projection into the attention finalize when w_out fits
    # comfortably in VMEM (saves the (B, N, HD) HBM round trip + 2nd matmul).
    fuse = (HD * C * x.dtype.itemsize) <= 4 * 1024 * 1024

    o = pallas_attention(qkv3, w_out_t if fuse else None,
                         n_heads=H, head_dim=D, n_feats=C,
                         kv_len=kv_len, fuse_out_proj=fuse)

    if fuse:
        out = o[:, :N, :]
    else:
        out = pallas_matmul(o.reshape(B * n_pad, HD), w_out_t)
        out = out.reshape(B, n_pad, C)[:, :N, :]
    return out, kv_to_cache


# ----------------------------------------------------------------------------
# Pure-JAX reference (torch weight layout) for verification only
# ----------------------------------------------------------------------------
def attention_reference(x, w_qkv, w_out, n_heads, head_dim):
    B, N, C = x.shape
    H, D = n_heads, head_dim
    qkv = (x.reshape(B * N, C) @ w_qkv.T).reshape(B, N, H, D, 3)
    q, k, v = qkv[..., 0], qkv[..., 1], qkv[..., 2]
    kv_to_cache = jnp.stack([k, v], axis=2)
    qh = jnp.transpose(q, (0, 2, 1, 3))
    kh = jnp.transpose(k, (0, 2, 1, 3))
    vh = jnp.transpose(v, (0, 2, 1, 3))
    s = jnp.einsum("bhid,bhjd->bhij", qh, kh) / math.sqrt(D)
    a = jax.nn.softmax(s, axis=-1)
    o = jnp.einsum("bhij,bhjd->bhid", a, vh)
    o = jnp.transpose(o, (0, 2, 1, 3)).reshape(B * N, H * D)
    out = (o @ w_out.T).reshape(B, N, C)
    return out, kv_to_cache


# ----------------------------------------------------------------------------
if __name__ == "__main__":
    # Small, module-consistent shapes.  H*D = 128 exercises the zero-copy
    # column-block q/k/v path; N = 64 exercises the pad-to-128 + key-mask path.
    B, N = 2, 64
    n_feats, n_heads, head_dim = 64, 4, 32

    key = jax.random.PRNGKey(0)
    k_x, k_qkv, k_out = jax.random.split(key, 3)

    x = jax.random.normal(k_x, (B, N, n_feats), dtype=jnp.float32)

    # torch Linear default init: U(-1/sqrt(fan_in), 1/sqrt(fan_in))
    bound_qkv = 1.0 / math.sqrt(n_feats)
    w_qkv = jax.random.uniform(
        k_qkv, (3 * n_heads * head_dim, n_feats),
        minval=-bound_qkv, maxval=bound_qkv, dtype=jnp.float32,
    )
    bound_out = 1.0 / math.sqrt(n_heads * head_dim)
    w_out = jax.random.uniform(
        k_out, (n_feats, n_heads * head_dim),
        minval=-bound_out, maxval=bound_out, dtype=jnp.float32,
    )

    # one-time relayout + scale folding (outside hot path)
    w_qkv_packed, w_out_t = prepare_weights(w_qkv, w_out, n_heads, head_dim)

    out, kv_cache = attention_forward(x, w_qkv_packed, w_out_t,
                                      n_heads, head_dim)
    out = jax.block_until_ready(out)
    kv_cache = jax.block_until_ready(kv_cache)

    ref_out, ref_kv = attention_reference(x, w_qkv, w_out, n_heads, head_dim)

    assert out.shape == (B, N, n_feats)
    assert kv_cache.shape == (B, N, 2, n_heads, head_dim)
    assert jnp.allclose(kv_cache, ref_kv, atol=2e-4, rtol=2e-4)
    # out tolerance slightly loosened: scale folded into the weight, approx
    # reciprocal (+ Newton step) and the fused out-projection change the fp
    # rounding order vs the reference.
    assert jnp.allclose(out, ref_out, atol=1e-3, rtol=1e-3)

    print("KERNEL_OK")
</pallas_src>

<mosaic_0001>
module attributes {stable_mosaic.version = 11 : i64} {
  func.func @_matmul_kernel(%arg0: i32, %arg1: i32, %arg2: i32, %arg3: memref<256x64xf32, #tpu.memory_space<vmem>>, %arg4: memref<64x128xf32, #tpu.memory_space<vmem>>, %arg5: memref<256x128xf32, #tpu.memory_space<vmem>>, %arg6: memref<256x128xf32, #tpu.memory_space<vmem>>) attributes {dimension_semantics = [#tpu.dimension_semantics<parallel>, #tpu.dimension_semantics<parallel>, #tpu.dimension_semantics<arbitrary>], iteration_bounds = array<i64: 1, 3, 1>, scalar_prefetch = 0 : i64, scratch_operands = 1 : i64, tpu.core_type = #tpu.core_type<tc>, window_params = [{transform_indices = @transform_0, window_bounds = array<i64: 256, 64>}, {transform_indices = @transform_1, window_bounds = array<i64: 64, 128>}, {transform_indices = @transform_2, window_bounds = array<i64: 256, 128>}]} {
    %c0_i32 = arith.constant 0 : i32
    %0 = arith.cmpi eq, %arg2, %c0_i32 : i32
    %1 = arith.extui %0 : i1 to i32
    %c0_i32_0 = arith.constant 0 : i32
    %2 = arith.cmpi ne, %1, %c0_i32_0 : i32
    scf.if %2 {
      %cst_10 = arith.constant 0.000000e+00 : f32
      %12 = vector.broadcast %cst_10 : f32 to vector<256x128xf32>
      %c0_11 = arith.constant 0 : index
      %c0_12 = arith.constant 0 : index
      %13 = vector.load %arg6[%c0_11, %c0_12] : memref<256x128xf32, #tpu.memory_space<vmem>>, vector<256x128xf32>
      tpu.vector_store %arg6[%c0_11, %c0_12], %12 {strides = array<i32>} : memref<256x128xf32, #tpu.memory_space<vmem>>, vector<256x128xf32>,
    } else {
    }
    %c0 = arith.constant 0 : index
    %c0_1 = arith.constant 0 : index
    %3 = vector.load %arg6[%c0, %c0_1] : memref<256x128xf32, #tpu.memory_space<vmem>>, vector<256x128xf32>
    %c0_2 = arith.constant 0 : index
    %c0_3 = arith.constant 0 : index
    %4 = vector.load %arg3[%c0_2, %c0_3] : memref<256x64xf32, #tpu.memory_space<vmem>>, vector<256x64xf32>
    %c0_4 = arith.constant 0 : index
    %c0_5 = arith.constant 0 : index
    %5 = vector.load %arg4[%c0_4, %c0_5] : memref<64x128xf32, #tpu.memory_space<vmem>>, vector<64x128xf32>
    %cst = arith.constant dense<0.000000e+00> : vector<256x128xf32>
    %6 = tpu.matmul %4, %5, %cst {dimension_numbers = #tpu.dot_dimension_numbers<[1], [0], [0], [1], [0, 0, 1, 1], [], []>} : vector<256x64xf32>, vector<64x128xf32>, vector<256x128xf32> -> vector<256x128xf32>
    %7 = arith.addf %3, %6 : vector<256x128xf32>
    %c0_6 = arith.constant 0 : index
    %c0_7 = arith.constant 0 : index
    %8 = vector.load %arg6[%c0_6, %c0_7] : memref<256x128xf32, #tpu.memory_space<vmem>>, vector<256x128xf32>
    tpu.vector_store %arg6[%c0_6, %c0_7], %7 {strides = array<i32>} : memref<256x128xf32, #tpu.memory_space<vmem>>, vector<256x128xf32>,
    %c0_i32_8 = arith.constant 0 : i32
    %9 = arith.cmpi eq, %arg2, %c0_i32_8 : i32
    %10 = arith.extui %9 : i1 to i32
    %c0_i32_9 = arith.constant 0 : i32
    %11 = arith.cmpi ne, %10, %c0_i32_9 : i32
    scf.if %11 {
      %c0_10 = arith.constant 0 : index
      %c0_11 = arith.constant 0 : index
      %12 = vector.load %arg6[%c0_10, %c0_11] : memref<256x128xf32, #tpu.memory_space<vmem>>, vector<256x128xf32>
      %c0_12 = arith.constant 0 : index
      %c0_13 = arith.constant 0 : index
      %13 = vector.load %arg5[%c0_12, %c0_13] : memref<256x128xf32, #tpu.memory_space<vmem>>, vector<256x128xf32>
      tpu.vector_store %arg5[%c0_12, %c0_13], %12 {strides = array<i32>} : memref<256x128xf32, #tpu.memory_space<vmem>>, vector<256x128xf32>,
    } else {
    }
    return
  }
  func.func @transform_0(%arg0: i32, %arg1: i32, %arg2: i32) -> (i32, i32) {
    %c0_i32 = arith.constant 0 : i32
    return %arg0, %arg2 : i32, i32
  }
  func.func @transform_1(%arg0: i32, %arg1: i32, %arg2: i32) -> (i32, i32) {
    %c0_i32 = arith.constant 0 : i32
    return %arg2, %arg1 : i32, i32
  }
  func.func @transform_2(%arg0: i32, %arg1: i32, %arg2: i32) -> (i32, i32) {
    %c0_i32 = arith.constant 0 : i32
    return %arg0, %arg1 : i32, i32
  }
}

</mosaic_0001>

<bundles_post_ra>
// kernel: tpu_custom_call.1
= control target key start
LH: loop header
LB: loop body
LE: loop exit
PB: predicated region body
PF: predicated region fallthrough
CT: control target
= control target key end

     0   :  { %7 = vsyncpa [#allocation5], 0  ;;  %s1558_s0 = inlined_call_operand.vmem [shape: f32[256,64], index: 0, kind: input, shape index: {}]   ;;  %s1559_s1 = inlined_call_operand.vmem [shape: f32[64,384], index: 1, kind: input, shape index: {}]   ;;  %s1560_s2 = inlined_call_operand.hbm [shape: f32[256,384], index: 2, kind: output, shape index: {}]  }
   0x1   :  { %9 = vsyncpa [#allocation5 + $0x1], 0  ;;  %s1265_s9 = smov 0   ;;  %s1267_s10 = smov 0  }
   0x2   :  { %s1269_s11 = smov 0   ;;  %s1271_s12 = smov 0  }
   0x3   :  { %s1273_s13 = smov 0   ;;  %s1275_s14 = smov 0  }
   0x4 LB: > { %s944_s15 = sadd.s32 4294967295, %s1244_s14   ;;  %s945_s16 = sadd.s32 4294967294, %s1244_s14   ;;  %s1244_s14 = sphi %s1275_s14, %s15_s14   ;;  %s1240_s13 = sphi %s1273_s13, %s1567_s13   ;;  %s1236_s12 = sphi %s1271_s12, %s1566_s12   ;;  %s1232_s11 = sphi %s1269_s11, %s1565_s11   ;;  %s1228_s10 = sphi %s1267_s10, %s1564_s10   ;;  %s1224_s9 = sphi %s1265_s9, %s1563_s9  }
   0x5   : > { %s30_s17 = sadd.s32 1, %s1240_s13  ;;  %s71_s18 = sadd.s32 1, %s1232_s11 }
   0x6   : > { %p32_p0 = scmp.ge.s32.totalorder %s30_s17, 3  ;;  %p78_p1 = scmp.ne.s32.totalorder %s1232_s11, %s1228_s10 }
   0x7   : > { %p79_p2 = scmp.eq.s32.totalorder %s1244_s14, 0  ;;  %p110_p3 = scmp.eq.s32.totalorder %s944_s15, 2 }
   0x8   : > { %s1569_s17 = smov (%p32_p0, %s30_s17), 0  ;;  %p115_p6 = scmp.ne.s32.totalorder %s1228_s10, %s1224_s9 }
   0x9   : > { %p80_p4 = por %p79_p2, %p78_p1  ;;  %p1304_p5 = por %p110_p3, %p78_p1 }
   0xa   : > { %s67_s20 = ssub.s32 %s1240_s13, %s1569_s17  ;;  %p116_p8 = scmp.eq.s32.totalorder %s945_s16, 2 }
   0xb   : > { %p69_p7 = scmp.eq.s32.totalorder %s67_s20, 0  ;;  %p948_p10 = scmp.ge.s32.totalorder %s1244_s14, 3 }
   0xc   : > { %p1315_p9 = por %p116_p8, %p115_p6 }
   0xd   : > { %s1313_s21 = scalar_select %p69_p7, %s1232_s11, %s71_s18  }
   0xe   : > { %144 = sbr.rel (%p948_p10) target bundleno = 27 (0x1b), region = 20 }
  0x13   : > { %147 = sbr.rel (!%p80_p4) target bundleno = 27 (0x1b), region = 24  ;;  %s149_s23 = sand.u32 (%p80_p4), 1, %s1232_s11  }
  0x14   : > { %s950_s24 = sshll.u32 (%p80_p4), %s1240_s13, 3  ;;  %s949_s25 = sshll.u32 (%p80_p4), %s149_s23, 6 }
  0x15   : > { %s156_s28 = scalar_lea.vmem (%p80_p4), %s1559_s1, %s950_s24  ;;  %s151_s29 = scalar_lea.vmem (%p80_p4), [#allocation3], %s949_s25 }
  0x16   : > { %v199_v0 = vld [vmem:[%s156_s28] sm:$0xff] (%p80_p4)  ;;  %v201_v1 = vld [vmem:[%s156_s28 + $0x18] sm:$0xff] (%p80_p4)  ;;  %v203_v2 = vld [vmem:[%s156_s28 + $0x30] sm:$0xff] (%p80_p4) }
  0x17   : > { %200 = vst [vmem:[%s151_s29] sm:$0xff] (%p80_p4), %v199_v0  ;;  %202 = vst [vmem:[%s151_s29 + $0x8] sm:$0xff] (%p80_p4), %v201_v1  ;;  %v205_v3 = vld [vmem:[%s156_s28 + $0x48] sm:$0xff] (%p80_p4)  ;;  %v207_v4 = vld [vmem:[%s156_s28 + $0x60] sm:$0xff] (%p80_p4) }
  0x18   : > { %204 = vst [vmem:[%s151_s29 + $0x10] sm:$0xff] %v203_v2  ;;  %v209_v5 = vld [vmem:[%s156_s28 + $0x78] sm:$0xff]  ;;  %206 = vst [vmem:[%s151_s29 + $0x18] sm:$0xff] %v205_v3  ;;  %v211_v6 = vld [vmem:[%s156_s28 + $0x90] sm:$0xff] }
  0x19   : > { %208 = vst [vmem:[%s151_s29 + $0x20] sm:$0xff] %v207_v4  ;;  %210 = vst [vmem:[%s151_s29 + $0x28] sm:$0xff] %v209_v5  ;;  %v213_v7 = vld [vmem:[%s156_s28 + $0xa8] sm:$0xff] }
  0x1a   : > { %212 = vst [vmem:[%s151_s29 + $0x30] sm:$0xff] %v211_v6  ;;  %214 = vst [vmem:[%s151_s29 + $0x38] sm:$0xff] %v213_v7 }
  0x1b PF: > { %p951_p11 = scmp.ge.s32.totalorder %s1244_s14, 1  ;;  %p219_p12 = scmp.lt.s32.totalorder %s1244_s14, 4 }
  0x1d   : > { %p220_p13 = pnand %p951_p11, %p219_p12 }
  0x1e   : > { %s1328_s30 = sand.u32 (!%p220_p13), 1, %s1228_s10   ;;  %s987_s3 = sshll.u32 (!%p220_p13), %s1236_s12, 7 }
  0x1f   : > { %223 = sbr.rel (%p220_p13) target bundleno = 292 (0x124), region = 62  ;;  %s952_s7 = sshll.u32 (!%p220_p13), %s1328_s30, 6 }
  0x20   : > { %s1339_s8 = scalar_lea.vmem (!%p220_p13), [#allocation3], %s952_s7  ;;  %s953_s28 = sshll.u32 (!%p220_p13), %s1328_s30, 8 }
  0x21   : > { %s1470_s29 = scalar_lea.vmem (!%p220_p13), [#allocation4], %s953_s28  ;;  %s1505_s7 = scalar_lea.hbm (!%p220_p13), %s1560_s2, %s987_s3 }
  0x22   : > { %s843_s4 = sshll.u32 (!%p220_p13), %s1470_s29, 4  ;;  %s828_s12 = scalar_lea.sflag (!%p220_p13), [#allocation5], %s1328_s30  ;;  %s1507_s4 = int_to_ptr.vmem [resolvable:$true] %s843_s4 }
  0x23   : > { %s1246_s15 = smov (!%p220_p13), [#allocation4]  }
  0x24   : > { %v334_v8 = vld [vmem:[%s1558_s0] sm:$0xff]  ;;  %vm374_vm0 = vcmask 523264   ;;  %v373_v10 = vld [vmem:[%s1339_s8 + $0x38] sm:$0xff]  ;;  %v372_v11 = vld [vmem:[%s1339_s8 + $0x30] sm:$0xff]  ;;  %s1172_s16 = sshll.u32 %s1246_s15, 4  ;;  %s1173_s16 = int_to_ptr.vmem [resolvable:$false] %s1172_s16 }
  0x25   : > { %v350_v9 = vld [vmem:[%s1558_s0 + $0x80] sm:$0xff]  ;;  %1046 = vmatprep.mubr.msk.f32.mxu0 %vm374_vm0, %v334_v8  ;;  %1030 = vmatprep.subr.mxu0 %v373_v10  ;;  %v371_v12 = vld [vmem:[%s1339_s8 + $0x28] sm:$0xff]  ;;  %v369_v14 = vld [vmem:[%s1339_s8 + $0x18] sm:$0xff]  ;;  %s1174_s18 = scalar_lea.vmem %s1173_s16, 8192  ;;  %p1175_p3 = scmp.lt.s32.totalorder %s1507_s4, %s1173_s16 }
  0x26   : > { %1070 = vmatprep.mubr.msk.f32.mxu1 %vm374_vm0, %v350_v9  ;;  %1094 = vmatprep.subr.mxu1 %v373_v10  ;;  %v370_v13 = vld [vmem:[%s1339_s8 + $0x20] sm:$0xff]  ;;  %v368_v15 = vld [vmem:[%s1339_s8 + $0x10] sm:$0xff]  ;;  %v367_v16 = vld [vmem:[%s1339_s8 + $0x8] sm:$0xff] }
  0x27   : > { %1031 = vmatpush3.msra.mxu0 %v373_v10  ;;  %1102 = vmatpush3.msra.mxu1 %v373_v10  ;;  %v366_v17 = vld [vmem:[%s1339_s8] sm:$0xff]  ;;  %v335_v18 = vld [vmem:[%s1558_s0 + $0x8] sm:$0xff]  ;;  %v336_v20 = vld [vmem:[%s1558_s0 + $0x10] sm:$0xff]  ;;  %s1168_s8 = scalar_lea.vmem %s1507_s4, 4096 }
  0x28   : > { %1032 = vmatprep.subr.mxu0 %v372_v11  ;;  %1095 = vmatprep.subr.mxu1 %v372_v11  ;;  %v351_v19 = vld [vmem:[%s1558_s0 + $0x88] sm:$0xff]  ;;  %v352_v21 = vld [vmem:[%s1558_s0 + $0x90] sm:$0xff]  ;;  %v337_v22 = vld [vmem:[%s1558_s0 + $0x18] sm:$0xff]  ;;  %p1169_p0 = scmp.ne.s32.totalorder %s1507_s4, %s1168_s8  ;;  %p1176_p4 = scmp.lt.s32.totalorder %s1174_s18, %s1168_s8 }
  0x29   : > { %1033 = vmatpush3.msra.mxu0 %v372_v11  ;;  %1103 = vmatpush3.msra.mxu1 %v372_v11  ;;  %v353_v23 = vld [vmem:[%s1558_s0 + $0x98] sm:$0xff]  ;;  %v338_v24 = vld [vmem:[%s1558_s0 + $0x20] sm:$0xff]  ;;  %v339_v26 = vld [vmem:[%s1558_s0 + $0x28] sm:$0xff] }
  0x2a   : > { %1034 = vmatprep.subr.mxu0 %v371_v12  ;;  %1096 = vmatprep.subr.mxu1 %v371_v12  ;;  %v354_v25 = vld [vmem:[%s1558_s0 + $0xa0] sm:$0xff]  ;;  %v355_v27 = vld [vmem:[%s1558_s0 + $0xa8] sm:$0xff]  ;;  %v340_v28 = vld [vmem:[%s1558_s0 + $0x30] sm:$0xff]  ;;  %p1170_p1 = pnand %p1169_p0, %p1304_p5  ;;  %p1177_p6 = por %p1176_p4, %p1175_p3 }
  0x2b   : > { %1035 = vmatpush3.msra.mxu0 %v371_v12  ;;  %1104 = vmatpush3.msra.mxu1 %v371_v12  ;;  %v356_v29 = vld [vmem:[%s1558_s0 + $0xb0] sm:$0xff]  ;;  %v341_v30 = vld [vmem:[%s1558_s0 + $0x38] sm:$0xff]  ;;  %v342_v32 = vld [vmem:[%s1558_s0 + $0x40] sm:$0xff] }
  0x2c   : > { %1036 = vmatprep.subr.mxu0 %v370_v13  ;;  %1097 = vmatprep.subr.mxu1 %v370_v13  ;;  %v357_v31 = vld [vmem:[%s1558_s0 + $0xb8] sm:$0xff]  ;;  %v358_v33 = vld [vmem:[%s1558_s0 + $0xc0] sm:$0xff]  ;;  %v343_v34 = vld [vmem:[%s1558_s0 + $0x48] sm:$0xff]  ;;  %p1171_p2 = pneg %p1170_p1 }
  0x2d   : > { %1037 = vmatpush3.msra.mxu0 %v370_v13  ;;  %1105 = vmatpush3.msra.mxu1 %v370_v13  ;;  %v359_v35 = vld [vmem:[%s1558_s0 + $0xc8] sm:$0xff]  ;;  %v344_v36 = vld [vmem:[%s1558_s0 + $0x50] sm:$0xff]  ;;  %v345_v38 = vld [vmem:[%s1558_s0 + $0x58] sm:$0xff] }
  0x2e   : > { %1038 = vmatprep.subr.mxu0 %v369_v14  ;;  %1098 = vmatprep.subr.mxu1 %v369_v14  ;;  %v360_v37 = vld [vmem:[%s1558_s0 + $0xd0] sm:$0xff]  ;;  %v361_v39 = vld [vmem:[%s1558_s0 + $0xd8] sm:$0xff]  ;;  %v346_v40 = vld [vmem:[%s1558_s0 + $0x60] sm:$0xff]  ;;  %p1178_p7 = pnand %p1177_p6, %p1171_p2 }
  0x2f   : > { %1039 = vmatpush3.msra.mxu0 %v369_v14  ;;  %1106 = vmatpush3.msra.mxu1 %v369_v14  ;;  %v362_v41 = vld [vmem:[%s1558_s0 + $0xe0] sm:$0xff]  ;;  %v347_v42 = vld [vmem:[%s1558_s0 + $0x68] sm:$0xff]  ;;  %v348_v44 = vld [vmem:[%s1558_s0 + $0x70] sm:$0xff] }
  0x30   : > { %1040 = vmatprep.subr.mxu0 %v368_v15  ;;  %1099 = vmatprep.subr.mxu1 %v368_v15  ;;  %v363_v43 = vld [vmem:[%s1558_s0 + $0xe8] sm:$0xff]  ;;  %v364_v45 = vld [vmem:[%s1558_s0 + $0xf0] sm:$0xff]  ;;  %v349_v46 = vld [vmem:[%s1558_s0 + $0x78] sm:$0xff] }
  0x31   : > { %1041 = vmatpush3.msra.mxu0 %v368_v15  ;;  %1107 = vmatpush3.msra.mxu1 %v368_v15  ;;  %v365_v47 = vld [vmem:[%s1558_s0 + $0xf8] sm:$0xff] }
  0x32   : > { %1042 = vmatprep.subr.mxu0 %v367_v16  ;;  %1100 = vmatprep.subr.mxu1 %v367_v16 }
  0x33   : > { %1043 = vmatpush3.msra.mxu0 %v367_v16  ;;  %1108 = vmatpush3.msra.mxu1 %v367_v16 }
  0x34   : > { %1044 = vmatprep.subr.mxu0 %v366_v17  ;;  %1101 = vmatprep.subr.mxu1 %v366_v17 }
  0x35   : > { %1045 = vmatpush3.msra.mxu0 %v366_v17  ;;  %1109 = vmatpush3.msra.mxu1 %v366_v17 }
  0x36   : > { %1047 = vmatmul.mubr.msk.f32.vlgmr.msra.gmra.mxu0 %vm374_vm0, %v335_v18  ;;  %1071 = vmatmul.mubr.msk.f32.vlgmr.msra.gmra.mxu1 %vm374_vm0, %v351_v19 }
  0x37   : > { %1049 = vmatprep.mubr.msk.f32.mxu0 %vm374_vm0, %v336_v20  ;;  %1073 = vmatprep.mubr.msk.f32.mxu1 %vm374_vm0, %v352_v21 }
  0x3a   : > { %1050 = vmatmul.mubr.msk.f32.gmra.mxu0 %vm374_vm0, %v337_v22  ;;  %1074 = vmatmul.mubr.msk.f32.gmra.mxu1 %vm374_vm0, %v353_v23 }
  0x3b   : > { %1052 = vmatprep.mubr.msk.f32.mxu0 %vm374_vm0, %v338_v24  ;;  %1076 = vmatprep.mubr.msk.f32.mxu1 %vm374_vm0, %v354_v25 }
  0x3e   : > { %1053 = vmatmul.mubr.msk.f32.gmra.mxu0 %vm374_vm0, %v339_v26  ;;  %1077 = vmatmul.mubr.msk.f32.gmra.mxu1 %vm374_vm0, %v355_v27 }
  0x3f   : > { %1055 = vmatprep.mubr.msk.f32.mxu0 %vm374_vm0, %v340_v28  ;;  %1079 = vmatprep.mubr.msk.f32.mxu1 %vm374_vm0, %v356_v29 }
  0x42   : > { %1056 = vmatmul.mubr.msk.f32.gmra.mxu0 %vm374_vm0, %v341_v30  ;;  %1080 = vmatmul.mubr.msk.f32.gmra.mxu1 %vm374_vm0, %v357_v31 }
  0x43   : > { %1058 = vmatprep.mubr.msk.f32.mxu0 %vm374_vm0, %v342_v32  ;;  %1082 = vmatprep.mubr.msk.f32.mxu1 %vm374_vm0, %v358_v33 }
  0x46   : > { %1059 = vmatmul.mubr.msk.f32.gmra.mxu0 %vm374_vm0, %v343_v34  ;;  %1083 = vmatmul.mubr.msk.f32.gmra.mxu1 %vm374_vm0, %v359_v35 }
  0x47   : > { %1061 = vmatprep.mubr.msk.f32.mxu0 %vm374_vm0, %v344_v36  ;;  %1085 = vmatprep.mubr.msk.f32.mxu1 %vm374_vm0, %v360_v37 }
  0x4a   : > { %1062 = vmatmul.mubr.msk.f32.gmra.mxu0 %vm374_vm0, %v345_v38  ;;  %1086 = vmatmul.mubr.msk.f32.gmra.mxu1 %vm374_vm0, %v361_v39 }
  0x4b   : > { %1064 = vmatprep.mubr.msk.f32.mxu0 %vm374_vm0, %v346_v40  ;;  %1088 = vmatprep.mubr.msk.f32.mxu1 %vm374_vm0, %v362_v41 }
  0x4e   : > { %1065 = vmatmul.mubr.msk.f32.gmra.mxu0 %vm374_vm0, %v347_v42  ;;  %1089 = vmatmul.mubr.msk.f32.gmra.mxu1 %vm374_vm0, %v363_v43 }
  0x4f   : > { %1067 = vmatprep.mubr.msk.f32.mxu0 %vm374_vm0, %v348_v44  ;;  %1091 = vmatprep.mubr.msk.f32.mxu1 %vm374_vm0, %v364_v45 }
  0x52   : > { %1068 = vmatmul.mubr.msk.f32.gmra.mxu0 %vm374_vm0, %v349_v46  ;;  %1092 = vmatmul.mubr.msk.f32.gmra.mxu1 %vm374_vm0, %v365_v47 }
  0xf6   : > { %v1048_v48 = vpop.f32.mrf.mxu0  ;;  %v1072_v49 = vpop.f32.mrf.mxu1 }
  0xf7   : > { %796 = vst [vmem:[%s1470_s29 + $0x8] sm:$0xff] %v1048_v48  ;;  %812 = vst [vmem:[%s1470_s29 + $0x88] sm:$0xff] %v1072_v49 }
  0xf8   : > { %v537_v50 = vpop.f32.mrf.mxu0  ;;  %v617_v51 = vpop.f32.mrf.mxu1 }
  0xf9   : > { %795 = vst [vmem:[%s1470_s29] sm:$0xff] %v537_v50  ;;  %811 = vst [vmem:[%s1470_s29 + $0x80] sm:$0xff] %v617_v51 }
  0xfa   : > { %v1051_v52 = vpop.f32.mrf.mxu0  ;;  %v1075_v53 = vpop.f32.mrf.mxu1 }
  0xfb   : > { %798 = vst [vmem:[%s1470_s29 + $0x18] sm:$0xff] %v1051_v52  ;;  %814 = vst [vmem:[%s1470_s29 + $0x98] sm:$0xff] %v1075_v53 }
  0xfc   : > { %v547_v54 = vpop.f32.mrf.mxu0  ;;  %v627_v55 = vpop.f32.mrf.mxu1 }
  0xfd   : > { %797 = vst [vmem:[%s1470_s29 + $0x10] sm:$0xff] %v547_v54  ;;  %813 = vst [vmem:[%s1470_s29 + $0x90] sm:$0xff] %v627_v55 }
  0xfe   : > { %v1054_v56 = vpop.f32.mrf.mxu0  ;;  %v1078_v57 = vpop.f32.mrf.mxu1 }
  0xff   : > { %800 = vst [vmem:[%s1470_s29 + $0x28] sm:$0xff] %v1054_v56  ;;  %816 = vst [vmem:[%s1470_s29 + $0xa8] sm:$0xff] %v1078_v57 }
 0x100   : > { %v557_v58 = vpop.f32.mrf.mxu0  ;;  %v637_v59 = vpop.f32.mrf.mxu1 }
 0x101   : > { %799 = vst [vmem:[%s1470_s29 + $0x20] sm:$0xff] %v557_v58  ;;  %815 = vst [vmem:[%s1470_s29 + $0xa0] sm:$0xff] %v637_v59 }
 0x102   : > { %v1057_v60 = vpop.f32.mrf.mxu0  ;;  %v1081_v61 = vpop.f32.mrf.mxu1 }
 0x103   : > { %802 = vst [vmem:[%s1470_s29 + $0x38] sm:$0xff] %v1057_v60  ;;  %818 = vst [vmem:[%s1470_s29 + $0xb8] sm:$0xff] %v1081_v61 }
 0x104   : > { %v567_v62 = vpop.f32.mrf.mxu0  ;;  %v647_v63 = vpop.f32.mrf.mxu1 }
 0x105   : > { %801 = vst [vmem:[%s1470_s29 + $0x30] sm:$0xff] %v567_v62  ;;  %817 = vst [vmem:[%s1470_s29 + $0xb0] sm:$0xff] %v647_v63 }
 0x106   : > { %v1060_v0 = vpop.f32.mrf.mxu0  ;;  %v1084_v1 = vpop.f32.mrf.mxu1 }
 0x107   : > { %804 = vst [vmem:[%s1470_s29 + $0x48] sm:$0xff] %v1060_v0  ;;  %820 = vst [vmem:[%s1470_s29 + $0xc8] sm:$0xff] %v1084_v1 }
 0x108   : > { %v577_v2 = vpop.f32.mrf.mxu0  ;;  %v657_v3 = vpop.f32.mrf.mxu1 }
 0x109   : > { %803 = vst [vmem:[%s1470_s29 + $0x40] sm:$0xff] %v577_v2  ;;  %819 = vst [vmem:[%s1470_s29 + $0xc0] sm:$0xff] %v657_v3 }
 0x10a   : > { %v1063_v4 = vpop.f32.mrf.mxu0  ;;  %v1087_v5 = vpop.f32.mrf.mxu1 }
 0x10b   : > { %806 = vst [vmem:[%s1470_s29 + $0x58] sm:$0xff] %v1063_v4  ;;  %822 = vst [vmem:[%s1470_s29 + $0xd8] sm:$0xff] %v1087_v5 }
 0x10c   : > { %v587_v6 = vpop.f32.mrf.mxu0  ;;  %v667_v7 = vpop.f32.mrf.mxu1 }
 0x10d   : > { %805 = vst [vmem:[%s1470_s29 + $0x50] sm:$0xff] %v587_v6  ;;  %821 = vst [vmem:[%s1470_s29 + $0xd0] sm:$0xff] %v667_v7 }
 0x10e   : > { %v1066_v8 = vpop.f32.mrf.mxu0  ;;  %v1090_v9 = vpop.f32.mrf.mxu1 }
 0x10f   : > { %808 = vst [vmem:[%s1470_s29 + $0x68] sm:$0xff] %v1066_v8  ;;  %824 = vst [vmem:[%s1470_s29 + $0xe8] sm:$0xff] %v1090_v9 }
 0x110   : > { %v597_v10 = vpop.f32.mrf.mxu0  ;;  %v677_v11 = vpop.f32.mrf.mxu1 }
 0x111   : > { %807 = vst [vmem:[%s1470_s29 + $0x60] sm:$0xff] %v597_v10  ;;  %823 = vst [vmem:[%s1470_s29 + $0xe0] sm:$0xff] %v677_v11 }
 0x112   : > { %v1069_v12 = vpop.f32.mrf.mxu0  ;;  %v1093_v13 = vpop.f32.mrf.mxu1 }
 0x113   : > { %810 = vst [vmem:[%s1470_s29 + $0x78] sm:$0xff] %v1069_v12  ;;  %826 = vst [vmem:[%s1470_s29 + $0xf8] sm:$0xff] %v1093_v13 }
 0x114   : > { %v607_v14 = vpop.f32.mrf.mxu0  ;;  %v687_v15 = vpop.f32.mrf.mxu1 }
 0x115   : > { %809 = vst [vmem:[%s1470_s29 + $0x70] sm:$0xff] %v607_v14  ;;  %825 = vst [vmem:[%s1470_s29 + $0xf0] sm:$0xff] %v687_v15 }
 0x116   : > { %1181 = shalt.err (!%p1178_p7)
}
 0x117   : > { %s1182_s20 = scalar_lea.hbm %s1505_s7, 4096  ;;  %s1186_s25 = scalar_lea.hbm %s1560_s2, 12288 }
 0x118   : > { %p1183_p8 = scmp.ne.s32.totalorder %s1505_s7, %s1182_s20  ;;  %p1187_p12 = scmp.lt.s32.totalorder %s1505_s7, %s1560_s2 }
 0x119   : > { %p1188_p13 = scmp.lt.s32.totalorder %s1186_s25, %s1182_s20 }
 0x11a   : > { %p1184_p10 = pnand %p1183_p8, %p1304_p5 }
 0x11b   : > { %p1189_p0 = por %p1188_p13, %p1187_p12 }
 0x11c   : > { %p1185_p11 = pneg %p1184_p10 }
 0x11e   : > { %p1190_p1 = pnand %p1189_p0, %p1185_p11 }
 0x120   : > { %1193 = shalt.err (!%p1190_p1)
}
 0x121   : > { %s1247_s28 = smov 128   ;;  %s1248_s29 = smov 384  }
 0x122   : > { %s1249_s3 = smov 8  }
 0x123   : > { %1110 = dma.vmem_to_hbm [thread:$0]  (%p1304_p5), %s1507_s4, 4096, %s1505_s7, %s828_s12, %s1247_s28, %s1248_s29, %s1249_s3  }
 0x124 PF: > { %p1116_p2 = scmp.ge.s32.totalorder %s1244_s14, 2  ;;  %s858_s5 = sand.u32 1, %s1224_s9  }
 0x125   : > { %s859_s6 = scalar_lea.sflag [#allocation5], %s858_s5 }
 0x126   : > { %p1113_p3 = pnand %p1116_p2, %p1315_p9 }
 0x128   : > { %p1114_p4 = pneg %p1113_p3 }
 0x12a   : > { %1219 = dma.done.wait (%p1114_p4), %s859_s6, 4096  }
 0x12b   : > { %1221 = vsyncadd (%p1114_p4), %s859_s6, 4294963200  ;;  %s15_s14 = sadd.s32 1, %s1244_s14   ;;  %s1563_s9 = smov %s1228_s10 }
 0x12c   : > { %p12_p6 = scmp.ge.s32.totalorder %s15_s14, 5   ;;  %s1564_s10 = smov %s1232_s11 }
 0x12d   : > { %s1565_s11 = smov %s1313_s21  ;;  %s1566_s12 = smov %s1240_s13 }
 0x12e   : > { %s1567_s13 = smov %s1569_s17  ;;  %14 = sbr.rel (!%p12_p6) target bundleno = 4 (0x4), region = 117 }
 0x133   :  { %864 = vsyncpa [#allocation5], 1 }
 0x134   :  { %866 = vsyncpa [#allocation5 + $0x1], 1 }

</bundles_post_ra>
